<compile_context>
chip_gen: v7x
topology: tpu7x:2x2x1
jax: 0.10.0
libtpu: 0.0.40
codegen_flags: <defaults>
</compile_context>

<pallas_src>
import numpy as np
import jax
import jax.numpy as jnp
from jax.experimental import pallas as pl
from jax.experimental.pallas import tpu as pltpu


def _make_kernel(layers, K, insz, outsz, T, tb, use_slab):
    pad = K // 2
    Tflat = tb * T
    cmax = max(insz, outsz)

    def kernel(*refs):
        x_ref = refs[0]                               # (insz, tb*T)        bf16
        w_refs = refs[1:1 + layers]                   # (outsz, K*cin_l)    bf16, resident
        b_refs = refs[1 + layers:1 + 2 * layers]      # (outsz, 1)          f32,  resident
        tpos_ref = refs[1 + 2 * layers]               # (1, tb*T)           int32, resident
        o_ref = refs[2 + 2 * layers]                  # (outsz, tb*T)       f32 (residual carrier)
        xflat_ref = refs[3 + 2 * layers]              # (cmax, tb*T + 2pad) bf16 scratch
        slab_ref = refs[4 + 2 * layers] if use_slab else None

        # One-time hygiene zero; correctness never reads unmasked pad columns (see tap mask).
        @pl.when(pl.program_id(0) == 0)
        def _():
            xflat_ref[...] = jnp.zeros(xflat_ref.shape, xflat_ref.dtype)

        tpos = tpos_ref[...]                          # position within each batch row: 0..T-1

        for l in range(layers):
            cin = insz if l == 0 else outsz

            # Stage this layer's input (bf16) into the interior of the flat buffer: one copy.
            if l == 0:
                xflat_ref[:insz, pad:pad + Tflat] = x_ref[...]
            else:
                xflat_ref[:outsz, pad:pad + Tflat] = o_ref[...].astype(jnp.bfloat16)

            w = w_refs[l][...]                        # (outsz, K*cin) bf16
            bias = b_refs[l][...]                     # (outsz, 1)     f32

            if use_slab:
                # im2col: one lane-shifted, row-boundary-masked copy per tap, stacked along the
                # contraction axis, then ONE batched MXU matmul with lane dim N = tb*T.
                for k in range(K):
                    tap = xflat_ref[:cin, k:k + Tflat]
                    if k != pad:
                        valid = (tpos >= pad - k) & (tpos < T + pad - k)
                        tap = jnp.where(valid, tap, jnp.zeros_like(tap))
                    slab_ref[k * cin:(k + 1) * cin, :] = tap
                conv = jnp.dot(w, slab_ref[:K * cin, :],
                               preferred_element_type=jnp.float32)        # (outsz, tb*T) f32
            else:
                # Contraction already >= a full MXU pass: K accumulating matmuls, no slab dup.
                conv = None
                for k in range(K):
                    tap = xflat_ref[:cin, k:k + Tflat]
                    if k != pad:
                        valid = (tpos >= pad - k) & (tpos < T + pad - k)
                        tap = jnp.where(valid, tap, jnp.zeros_like(tap))
                    part = jnp.dot(w[:, k * cin:(k + 1) * cin], tap,
                                   preferred_element_type=jnp.float32)
                    conv = part if conv is None else conv + part

            act = jnp.maximum(conv + bias, 0.0)       # conv + bias + ReLU (dropout = identity)
            if l == 0:
                o_ref[...] = act
            else:
                o_ref[...] = o_ref[...] + act         # ResidualBlock: x + layer(x)

    return kernel


def _vmem_capacity_bytes():
    cap = 64 << 20                                    # safe fallback (v7x per-TC size)
    try:
        info = pltpu.get_tpu_info()
        cap = int(getattr(info, "vmem_capacity_bytes", cap))
    except Exception:
        pass
    if cap <= 0:
        cap = 64 << 20
    return cap


def _pick_tb(B, insz, outsz, T, K, vmem_cap):
    """Largest batch tile that fits ~half of VMEM, divides B, prefers 128-aligned lane width
    and (mildly) an even grid step count for 2-TensorCore chips."""
    cmax = max(insz, outsz)
    # per batch-row bytes: bf16 flat buffer + bf16 im2col slab + double-buffered bf16 input
    # block + double-buffered f32 output block.
    per_row = 2 * cmax * T + 2 * K * cmax * T + 2 * (2 * insz * T) + 2 * (4 * outsz * T)
    budget = max(vmem_cap // 2, 4 << 20)
    cap_tb = max(1, budget // max(per_row, 1))
    divisors = [d for d in range(1, B + 1) if B % d == 0 and d <= cap_tb]
    if not divisors:
        return 1
    aligned = [d for d in divisors if d == B or (d * T) % 128 == 0]
    pool = aligned if aligned else divisors
    tb = max(pool)
    steps = B // tb
    if steps > 1 and steps % 2 == 1:                  # v7x: even step count across 2 TCs
        even = [d for d in pool if (B // d) % 2 == 0 and d * 2 >= tb]
        if even:
            tb = max(even)
    return tb


def conv_encoder_stack(x, weights, biases, filtsz, *, tb=None):
    """x: (B, insz, T) f32.  weights[l]: (outsz, Cin_l, filtsz) f32 (Cin_0 = insz, else outsz).
    biases[l]: (outsz,) f32.  Returns (B, outsz, T) f32."""
    B, insz, T = x.shape
    outsz = weights[0].shape[0]
    K = int(filtsz)
    layers = len(weights)
    pad = K // 2
    cmax = max(insz, outsz)

    vmem_cap = _vmem_capacity_bytes()
    if tb is None:
        tb = _pick_tb(B, insz, outsz, T, K, vmem_cap)
    tb = max(1, min(int(tb), B))
    while B % tb:
        tb -= 1
    grid = (B // tb,)
    Tflat = tb * T

    # Fold the K taps into the contraction dim host-side: (O,Cin,K) -> (O,K,Cin) -> (O,K*Cin).
    w_fused = [jnp.transpose(w, (0, 2, 1)).reshape(w.shape[0], -1).astype(jnp.bfloat16)
               for w in weights]
    b_col = [jnp.asarray(b, jnp.float32).reshape(-1, 1) for b in biases]

    # NCT -> (C, B*T): one XLA layout pass (fused with the bf16 cast) so the kernel matmul's
    # lane/N dim is tb*T and the kernel body needs no transposes/reshapes at all.
    x2d = jnp.transpose(x, (1, 0, 2)).reshape(insz, B * T).astype(jnp.bfloat16)
    tpos = jnp.tile(jnp.arange(T, dtype=jnp.int32), (tb,)).reshape(1, Tflat)

    use_slab = (K * cmax) < 128

    in_specs = [pl.BlockSpec((insz, Tflat), lambda i: (0, i))]
    in_specs += [pl.BlockSpec(w.shape, lambda i: (0, 0)) for w in w_fused]   # resident weights
    in_specs += [pl.BlockSpec(b.shape, lambda i: (0, 0)) for b in b_col]     # resident biases
    in_specs += [pl.BlockSpec((1, Tflat), lambda i: (0, 0))]                 # resident positions
    out_spec = pl.BlockSpec((outsz, Tflat), lambda i: (0, i))

    scratch = [pltpu.VMEM((cmax, Tflat + 2 * pad), jnp.bfloat16)]            # padded flat input
    if use_slab:
        scratch.append(pltpu.VMEM((K * cmax, Tflat), jnp.bfloat16))          # im2col slab

    kernel = _make_kernel(layers, K, insz, outsz, T, tb, use_slab)

    flops = 2 * B * T * outsz * K * (insz + (layers - 1) * outsz)
    bytes_accessed = int(B * insz * T * 2 + B * outsz * T * 4
                         + sum(int(np.prod(w.shape)) for w in w_fused) * 2
                         + layers * outsz * 4)
    vmem_limit = max(32 << 20, min(int(vmem_cap * 3 // 4), 100 << 20))

    out2d = pl.pallas_call(
        kernel,
        out_shape=jax.ShapeDtypeStruct((outsz, B * T), jnp.float32),
        grid_spec=pltpu.PrefetchScalarGridSpec(
            num_scalar_prefetch=0,
            grid=grid,
            in_specs=in_specs,
            out_specs=out_spec,
            scratch_shapes=scratch,
        ),
        compiler_params=pltpu.CompilerParams(
            dimension_semantics=("parallel",),
            vmem_limit_bytes=vmem_limit,
        ),
        cost_estimate=pl.CostEstimate(flops=flops, transcendentals=0,
                                      bytes_accessed=bytes_accessed),
    )(x2d, *w_fused, *b_col, tpos)

    # (C, B*T) -> (B, C, T): one XLA layout pass on the output.
    return jnp.transpose(out2d.reshape(outsz, B, T), (1, 0, 2))


def reference_numpy(x, weights, biases, K):
    """Pure numpy re-implementation of ConvEncoderStack.forward (eval mode)."""
    pad = K // 2
    cur = x.astype(np.float32)
    for l, (w, b) in enumerate(zip(weights, biases)):
        B, cin, T = cur.shape
        O = w.shape[0]
        xp = np.pad(cur, ((0, 0), (0, 0), (pad, pad)))
        conv = np.zeros((B, O, T), np.float32)
        for t in range(T):
            win = xp[:, :, t:t + K]                   # (B, cin, K)
            conv[:, :, t] = np.einsum('ock,bck->bo', w, win) + b
        act = np.maximum(conv, 0.0)                   # ReLU; dropout is identity in eval
        cur = act if l == 0 else cur + act            # ResidualBlock after the 1st layer
    return cur


if __name__ == "__main__":
    # ConvEncoderStack(insz=4, outsz=8, filtsz=3, pdrop=0.5, layers=2) on (B=2, C=4, T=16).
    B, INSZ, OUTSZ, T = 2, 4, 8, 16
    FILTSZ = 3
    LAYERS = 2

    key = jax.random.PRNGKey(0)
    kx, *kp = jax.random.split(key, 1 + 2 * LAYERS)
    x = jax.random.normal(kx, (B, INSZ, T), dtype=jnp.float32)

    # Deterministic parameter init (PyTorch Conv1d default: U(-1/sqrt(Cin*K), 1/sqrt(Cin*K))).
    weights, biases = [], []
    for l in range(LAYERS):
        cin = INSZ if l == 0 else OUTSZ
        bound = 1.0 / np.sqrt(cin * FILTSZ)
        w = jax.random.uniform(kp[2 * l], (OUTSZ, cin, FILTSZ),
                               minval=-bound, maxval=bound, dtype=jnp.float32)
        b = jax.random.uniform(kp[2 * l + 1], (OUTSZ,),
                               minval=-bound, maxval=bound, dtype=jnp.float32)
        weights.append(w)
        biases.append(b)

    out = conv_encoder_stack(x, weights, biases, FILTSZ)
    out = jax.block_until_ready(out)

    ref = reference_numpy(np.asarray(x), [np.asarray(w) for w in weights],
                          [np.asarray(b) for b in biases], FILTSZ)
    np.testing.assert_allclose(np.asarray(out), ref, rtol=2e-2, atol=2e-2)

    print("KERNEL_OK")
</pallas_src>

<mosaic_0001>
module attributes {stable_mosaic.version = 11 : i64} {
  func.func @kernel(%arg0: i32, %arg1: memref<4x32xbf16, #tpu.memory_space<vmem>>, %arg2: memref<8x12xbf16, #tpu.memory_space<vmem>>, %arg3: memref<8x24xbf16, #tpu.memory_space<vmem>>, %arg4: memref<8x1xf32, #tpu.memory_space<vmem>>, %arg5: memref<8x1xf32, #tpu.memory_space<vmem>>, %arg6: memref<1x32xi32, #tpu.memory_space<vmem>>, %arg7: memref<8x32xf32, #tpu.memory_space<vmem>>, %arg8: memref<8x34xbf16, #tpu.memory_space<vmem>>, %arg9: memref<24x32xbf16, #tpu.memory_space<vmem>>) attributes {dimension_semantics = [#tpu.dimension_semantics<parallel>], iteration_bounds = array<i64: 1>, scalar_prefetch = 0 : i64, scratch_operands = 2 : i64, tpu.core_type = #tpu.core_type<tc>, window_params = [{transform_indices = @transform_0, window_bounds = array<i64: 4, 32>}, {pipeline_mode = #tpu.pipeline_mode<synchronous>, transform_indices = @transform_1, window_bounds = array<i64: 8, 12>}, {pipeline_mode = #tpu.pipeline_mode<synchronous>, transform_indices = @transform_2, window_bounds = array<i64: 8, 24>}, {pipeline_mode = #tpu.pipeline_mode<synchronous>, transform_indices = @transform_3, window_bounds = array<i64: 8, 1>}, {pipeline_mode = #tpu.pipeline_mode<synchronous>, transform_indices = @transform_4, window_bounds = array<i64: 8, 1>}, {pipeline_mode = #tpu.pipeline_mode<synchronous>, transform_indices = @transform_5, window_bounds = array<i64: 1, 32>}, {transform_indices = @transform_6, window_bounds = array<i64: 8, 32>}]} {
    %c0_i32 = arith.constant 0 : i32
    %0 = arith.cmpi eq, %arg0, %c0_i32 : i32
    %1 = arith.extui %0 : i1 to i32
    %c0_i32_0 = arith.constant 0 : i32
    %2 = arith.cmpi ne, %1, %c0_i32_0 : i32
    scf.if %2 {
      %cst_58 = arith.constant 0.000000e+00 : bf16
      %77 = vector.broadcast %cst_58 : bf16 to vector<8x34xbf16>
      %c0_59 = arith.constant 0 : index
      %c0_60 = arith.constant 0 : index
      %78 = vector.load %arg8[%c0_59, %c0_60] : memref<8x34xbf16, #tpu.memory_space<vmem>>, vector<8x34xbf16>
      tpu.vector_store %arg8[%c0_59, %c0_60], %77 {strides = array<i32>} : memref<8x34xbf16, #tpu.memory_space<vmem>>, vector<8x34xbf16>,
    } else {
    }
    %c0 = arith.constant 0 : index
    %c0_1 = arith.constant 0 : index
    %3 = vector.load %arg6[%c0, %c0_1] : memref<1x32xi32, #tpu.memory_space<vmem>>, vector<1x32xi32>
    %c0_2 = arith.constant 0 : index
    %c0_3 = arith.constant 0 : index
    %4 = vector.load %arg1[%c0_2, %c0_3] : memref<4x32xbf16, #tpu.memory_space<vmem>>, vector<4x32xbf16>
    %c0_4 = arith.constant 0 : index
    %c1 = arith.constant 1 : index
    %5 = vector.load %arg8[%c0_4, %c1] : memref<8x34xbf16, #tpu.memory_space<vmem>>, vector<4x32xbf16>
    tpu.vector_store %arg8[%c0_4, %c1], %4 {strides = array<i32>} : memref<8x34xbf16, #tpu.memory_space<vmem>>, vector<4x32xbf16>,
    %c0_5 = arith.constant 0 : index
    %c0_6 = arith.constant 0 : index
    %6 = vector.load %arg2[%c0_5, %c0_6] : memref<8x12xbf16, #tpu.memory_space<vmem>>, vector<8x12xbf16>
    %c0_7 = arith.constant 0 : index
    %c0_8 = arith.constant 0 : index
    %7 = vector.load %arg4[%c0_7, %c0_8] : memref<8x1xf32, #tpu.memory_space<vmem>>, vector<8x1xf32>
    %c0_9 = arith.constant 0 : index
    %c0_10 = arith.constant 0 : index
    %8 = vector.load %arg8[%c0_9, %c0_10] : memref<8x34xbf16, #tpu.memory_space<vmem>>, vector<4x32xbf16>
    %c1_i32 = arith.constant 1 : i32
    %9 = vector.broadcast %c1_i32 : i32 to vector<1x32xi32>
    %10 = arith.cmpi sge, %3, %9 : vector<1x32xi32>
    %c17_i32 = arith.constant 17 : i32
    %11 = vector.broadcast %c17_i32 : i32 to vector<1x32xi32>
    %12 = arith.cmpi slt, %3, %11 : vector<1x32xi32>
    %13 = arith.andi %10, %12 : vector<1x32xi1>
    %cst = arith.constant 0.000000e+00 : bf16
    %14 = vector.broadcast %cst : bf16 to vector<4x32xbf16>
    %15 = vector.shape_cast %13 : vector<1x32xi1> to vector<1x32xi1>
    %16 = vector.broadcast %15 : vector<1x32xi1> to vector<4x32xi1>
    %17 = arith.select %16, %8, %14 : vector<4x32xi1>, vector<4x32xbf16>
    %c0_11 = arith.constant 0 : index
    %c0_12 = arith.constant 0 : index
    %18 = vector.load %arg9[%c0_11, %c0_12] : memref<24x32xbf16, #tpu.memory_space<vmem>>, vector<4x32xbf16>
    tpu.vector_store %arg9[%c0_11, %c0_12], %17 {strides = array<i32>} : memref<24x32xbf16, #tpu.memory_space<vmem>>, vector<4x32xbf16>,
    %c0_13 = arith.constant 0 : index
    %c1_14 = arith.constant 1 : index
    %19 = vector.load %arg8[%c0_13, %c1_14] : memref<8x34xbf16, #tpu.memory_space<vmem>>, vector<4x32xbf16>
    %c4 = arith.constant 4 : index
    %c0_15 = arith.constant 0 : index
    %20 = vector.load %arg9[%c4, %c0_15] : memref<24x32xbf16, #tpu.memory_space<vmem>>, vector<4x32xbf16>
    tpu.vector_store %arg9[%c4, %c0_15], %19 {strides = array<i32>} : memref<24x32xbf16, #tpu.memory_space<vmem>>, vector<4x32xbf16>,
    %c0_16 = arith.constant 0 : index
    %c2 = arith.constant 2 : index
    %21 = vector.load %arg8[%c0_16, %c2] : memref<8x34xbf16, #tpu.memory_space<vmem>>, vector<4x32xbf16>
    %c-1_i32 = arith.constant -1 : i32
    %22 = vector.broadcast %c-1_i32 : i32 to vector<1x32xi32>
    %23 = arith.cmpi sge, %3, %22 : vector<1x32xi32>
    %c15_i32 = arith.constant 15 : i32
    %24 = vector.broadcast %c15_i32 : i32 to vector<1x32xi32>
    %25 = arith.cmpi slt, %3, %24 : vector<1x32xi32>
    %26 = arith.andi %23, %25 : vector<1x32xi1>
    %cst_17 = arith.constant 0.000000e+00 : bf16
    %27 = vector.broadcast %cst_17 : bf16 to vector<4x32xbf16>
    %28 = vector.shape_cast %26 : vector<1x32xi1> to vector<1x32xi1>
    %29 = vector.broadcast %28 : vector<1x32xi1> to vector<4x32xi1>
    %30 = arith.select %29, %21, %27 : vector<4x32xi1>, vector<4x32xbf16>
    %c8 = arith.constant 8 : index
    %c0_18 = arith.constant 0 : index
    %31 = vector.load %arg9[%c8, %c0_18] : memref<24x32xbf16, #tpu.memory_space<vmem>>, vector<4x32xbf16>
    tpu.vector_store %arg9[%c8, %c0_18], %30 {strides = array<i32>} : memref<24x32xbf16, #tpu.memory_space<vmem>>, vector<4x32xbf16>,
    %c0_19 = arith.constant 0 : index
    %c0_20 = arith.constant 0 : index
    %32 = vector.load %arg9[%c0_19, %c0_20] : memref<24x32xbf16, #tpu.memory_space<vmem>>, vector<12x32xbf16>
    %cst_21 = arith.constant dense<0.000000e+00> : vector<8x32xf32>
    %33 = tpu.matmul %6, %32, %cst_21 {dimension_numbers = #tpu.dot_dimension_numbers<[1], [0], [0], [1], [0, 0, 1, 1], [], []>} : vector<8x12xbf16>, vector<12x32xbf16>, vector<8x32xf32> -> vector<8x32xf32>
    %34 = vector.broadcast %7 : vector<8x1xf32> to vector<8x32xf32>
    %35 = arith.addf %33, %34 : vector<8x32xf32>
    %cst_22 = arith.constant 0.000000e+00 : f32
    %36 = vector.broadcast %cst_22 : f32 to vector<8x32xf32>
    %37 = arith.maximumf %35, %36 : vector<8x32xf32>
    %c0_23 = arith.constant 0 : index
    %c0_24 = arith.constant 0 : index
    %38 = vector.load %arg7[%c0_23, %c0_24] : memref<8x32xf32, #tpu.memory_space<vmem>>, vector<8x32xf32>
    tpu.vector_store %arg7[%c0_23, %c0_24], %37 {strides = array<i32>} : memref<8x32xf32, #tpu.memory_space<vmem>>, vector<8x32xf32>,
    %c0_25 = arith.constant 0 : index
    %c0_26 = arith.constant 0 : index
    %39 = vector.load %arg7[%c0_25, %c0_26] : memref<8x32xf32, #tpu.memory_space<vmem>>, vector<8x32xf32>
    %40 = arith.truncf %39 : vector<8x32xf32> to vector<8x32xbf16>
    %c0_27 = arith.constant 0 : index
    %c1_28 = arith.constant 1 : index
    %41 = vector.load %arg8[%c0_27, %c1_28] : memref<8x34xbf16, #tpu.memory_space<vmem>>, vector<8x32xbf16>
    tpu.vector_store %arg8[%c0_27, %c1_28], %40 {strides = array<i32>} : memref<8x34xbf16, #tpu.memory_space<vmem>>, vector<8x32xbf16>,
    %c0_29 = arith.constant 0 : index
    %c0_30 = arith.constant 0 : index
    %42 = vector.load %arg3[%c0_29, %c0_30] : memref<8x24xbf16, #tpu.memory_space<vmem>>, vector<8x24xbf16>
    %c0_31 = arith.constant 0 : index
    %c0_32 = arith.constant 0 : index
    %43 = vector.load %arg5[%c0_31, %c0_32] : memref<8x1xf32, #tpu.memory_space<vmem>>, vector<8x1xf32>
    %c0_33 = arith.constant 0 : index
    %c0_34 = arith.constant 0 : index
    %44 = vector.load %arg8[%c0_33, %c0_34] : memref<8x34xbf16, #tpu.memory_space<vmem>>, vector<8x32xbf16>
    %c1_i32_35 = arith.constant 1 : i32
    %45 = vector.broadcast %c1_i32_35 : i32 to vector<1x32xi32>
    %46 = arith.cmpi sge, %3, %45 : vector<1x32xi32>
    %c17_i32_36 = arith.constant 17 : i32
    %47 = vector.broadcast %c17_i32_36 : i32 to vector<1x32xi32>
    %48 = arith.cmpi slt, %3, %47 : vector<1x32xi32>
    %49 = arith.andi %46, %48 : vector<1x32xi1>
    %cst_37 = arith.constant 0.000000e+00 : bf16
    %50 = vector.broadcast %cst_37 : bf16 to vector<8x32xbf16>
    %51 = vector.shape_cast %49 : vector<1x32xi1> to vector<1x32xi1>
    %52 = vector.broadcast %51 : vector<1x32xi1> to vector<8x32xi1>
    %53 = arith.select %52, %44, %50 : vector<8x32xi1>, vector<8x32xbf16>
    %c0_38 = arith.constant 0 : index
    %c0_39 = arith.constant 0 : index
    %54 = vector.load %arg9[%c0_38, %c0_39] : memref<24x32xbf16, #tpu.memory_space<vmem>>, vector<8x32xbf16>
    tpu.vector_store %arg9[%c0_38, %c0_39], %53 {strides = array<i32>} : memref<24x32xbf16, #tpu.memory_space<vmem>>, vector<8x32xbf16>,
    %c0_40 = arith.constant 0 : index
    %c1_41 = arith.constant 1 : index
    %55 = vector.load %arg8[%c0_40, %c1_41] : memref<8x34xbf16, #tpu.memory_space<vmem>>, vector<8x32xbf16>
    %c8_42 = arith.constant 8 : index
    %c0_43 = arith.constant 0 : index
    %56 = vector.load %arg9[%c8_42, %c0_43] : memref<24x32xbf16, #tpu.memory_space<vmem>>, vector<8x32xbf16>
    tpu.vector_store %arg9[%c8_42, %c0_43], %55 {strides = array<i32>} : memref<24x32xbf16, #tpu.memory_space<vmem>>, vector<8x32xbf16>,
    %c0_44 = arith.constant 0 : index
    %c2_45 = arith.constant 2 : index
    %57 = vector.load %arg8[%c0_44, %c2_45] : memref<8x34xbf16, #tpu.memory_space<vmem>>, vector<8x32xbf16>
    %c-1_i32_46 = arith.constant -1 : i32
    %58 = vector.broadcast %c-1_i32_46 : i32 to vector<1x32xi32>
    %59 = arith.cmpi sge, %3, %58 : vector<1x32xi32>
    %c15_i32_47 = arith.constant 15 : i32
    %60 = vector.broadcast %c15_i32_47 : i32 to vector<1x32xi32>
    %61 = arith.cmpi slt, %3, %60 : vector<1x32xi32>
    %62 = arith.andi %59, %61 : vector<1x32xi1>
    %cst_48 = arith.constant 0.000000e+00 : bf16
    %63 = vector.broadcast %cst_48 : bf16 to vector<8x32xbf16>
    %64 = vector.shape_cast %62 : vector<1x32xi1> to vector<1x32xi1>
    %65 = vector.broadcast %64 : vector<1x32xi1> to vector<8x32xi1>
    %66 = arith.select %65, %57, %63 : vector<8x32xi1>, vector<8x32xbf16>
    %c16 = arith.constant 16 : index
    %c0_49 = arith.constant 0 : index
    %67 = vector.load %arg9[%c16, %c0_49] : memref<24x32xbf16, #tpu.memory_space<vmem>>, vector<8x32xbf16>
    tpu.vector_store %arg9[%c16, %c0_49], %66 {strides = array<i32>} : memref<24x32xbf16, #tpu.memory_space<vmem>>, vector<8x32xbf16>,
    %c0_50 = arith.constant 0 : index
    %c0_51 = arith.constant 0 : index
    %68 = vector.load %arg9[%c0_50, %c0_51] : memref<24x32xbf16, #tpu.memory_space<vmem>>, vector<24x32xbf16>
    %cst_52 = arith.constant dense<0.000000e+00> : vector<8x32xf32>
    %69 = tpu.matmul %42, %68, %cst_52 {dimension_numbers = #tpu.dot_dimension_numbers<[1], [0], [0], [1], [0, 0, 1, 1], [], []>} : vector<8x24xbf16>, vector<24x32xbf16>, vector<8x32xf32> -> vector<8x32xf32>
    %70 = vector.broadcast %43 : vector<8x1xf32> to vector<8x32xf32>
    %71 = arith.addf %69, %70 : vector<8x32xf32>
    %cst_53 = arith.constant 0.000000e+00 : f32
    %72 = vector.broadcast %cst_53 : f32 to vector<8x32xf32>
    %73 = arith.maximumf %71, %72 : vector<8x32xf32>
    %c0_54 = arith.constant 0 : index
    %c0_55 = arith.constant 0 : index
    %74 = vector.load %arg7[%c0_54, %c0_55] : memref<8x32xf32, #tpu.memory_space<vmem>>, vector<8x32xf32>
    %75 = arith.addf %74, %73 : vector<8x32xf32>
    %c0_56 = arith.constant 0 : index
    %c0_57 = arith.constant 0 : index
    %76 = vector.load %arg7[%c0_56, %c0_57] : memref<8x32xf32, #tpu.memory_space<vmem>>, vector<8x32xf32>
    tpu.vector_store %arg7[%c0_56, %c0_57], %75 {strides = array<i32>} : memref<8x32xf32, #tpu.memory_space<vmem>>, vector<8x32xf32>,
    return
  }
  func.func @transform_0(%arg0: i32) -> (i32, i32) {
    %c0_i32 = arith.constant 0 : i32
    %c0_i32_0 = arith.constant 0 : i32
    return %c0_i32, %arg0 : i32, i32
  }
  func.func @transform_1(%arg0: i32) -> (i32, i32) {
    %c0_i32 = arith.constant 0 : i32
    %c0_i32_0 = arith.constant 0 : i32
    %c0_i32_1 = arith.constant 0 : i32
    return %c0_i32, %c0_i32_0 : i32, i32
  }
  func.func @transform_2(%arg0: i32) -> (i32, i32) {
    %c0_i32 = arith.constant 0 : i32
    %c0_i32_0 = arith.constant 0 : i32
    %c0_i32_1 = arith.constant 0 : i32
    return %c0_i32, %c0_i32_0 : i32, i32
  }
  func.func @transform_3(%arg0: i32) -> (i32, i32) {
    %c0_i32 = arith.constant 0 : i32
    %c0_i32_0 = arith.constant 0 : i32
    %c0_i32_1 = arith.constant 0 : i32
    return %c0_i32, %c0_i32_0 : i32, i32
  }
  func.func @transform_4(%arg0: i32) -> (i32, i32) {
    %c0_i32 = arith.constant 0 : i32
    %c0_i32_0 = arith.constant 0 : i32
    %c0_i32_1 = arith.constant 0 : i32
    return %c0_i32, %c0_i32_0 : i32, i32
  }
  func.func @transform_5(%arg0: i32) -> (i32, i32) {
    %c0_i32 = arith.constant 0 : i32
    %c0_i32_0 = arith.constant 0 : i32
    %c0_i32_1 = arith.constant 0 : i32
    return %c0_i32, %c0_i32_0 : i32, i32
  }
  func.func @transform_6(%arg0: i32) -> (i32, i32) {
    %c0_i32 = arith.constant 0 : i32
    %c0_i32_0 = arith.constant 0 : i32
    return %c0_i32, %arg0 : i32, i32
  }
}

</mosaic_0001>

<bundles_post_ra>
// kernel: tpu_custom_call.1
= control target key start
LH: loop header
LB: loop body
LE: loop exit
PB: predicated region body
PF: predicated region fallthrough
CT: control target
= control target key end

     0   :  { %v55_v1 = vlaneseq  ;;  %s332_s23 = smov 1   ;;  %vm31_vm0 = vcmask 273408   ;;  %v333_v3 = vmov 0   ;;  %s430_s0 = inlined_call_operand.vmem [shape: bf16[4,32], index: 0, kind: input, shape index: {}]   ;;  %s431_s1 = inlined_call_operand.vmem [shape: bf16[8,12], index: 1, kind: input, shape index: {}]   ;;  %s432_s2 = inlined_call_operand.vmem [shape: bf16[8,24], index: 2, kind: input, shape index: {}]   ;;  %s433_s3 = inlined_call_operand.vmem [shape: f32[8,1], index: 3, kind: input, shape index: {}]   ;;  %s434_s4 = inlined_call_operand.vmem [shape: f32[8,1], index: 4, kind: input, shape index: {}]   ;;  %s435_s5 = inlined_call_operand.vmem [shape: s32[1,32], index: 5, kind: input, shape index: {}]   ;;  %s436_s6 = inlined_call_operand.hbm [shape: f32[8,32], index: 6, kind: output, shape index: {}]  }
   0x1   :  { %v268_v0 = vld.sshfl [vmem:[%s430_s0] sm:$0x3 pattern:$0x76325410]  ;;  %304 = vset.pattern.permute.xlu1 %v333_v3  ;;  %32 = vst.msk [vmem:[#allocation2] sm:$0xf] %vm31_vm0, %v333_v3  ;;  %303 = vset.pattern.permute.xlu0 %v333_v3 }
   0x2   :  { %43 = vrot.lane.b32.xlu0 %v268_v0, %s332_s23  ;;  %v33_v2 = vld [vmem:[%s435_s5] sm:$0x1]  ;;  %v56_v4 = vshrl.u32 %v55_v1, 7 }
   0x3   :  { %vm73_vm1 = vcmp.ge.s32.totalorder %v33_v2, 4294967295  ;;  %vm74_vm2 = vcmp.lt.s32.totalorder %v33_v2, 15  ;;  %vm51_vm4 = vcmp.ge.s32.totalorder %v33_v2, 1  ;;  %vm52_vm5 = vcmp.lt.s32.totalorder %v33_v2, 17 }
   0x4   :  { %vm75_vm3 = vmand %vm73_vm1, %vm74_vm2  ;;  %v57_v5 = vsub.s32 0, %v56_v4 }
   0x5   :  { %v76_v6 = vsel %vm75_vm3, 1, %v333_v3  ;;  %vm53_vm6 = vmand %vm51_vm4, %vm52_vm5 }
   0x6   :  { %v54_v7 = vsel %vm53_vm6, 1, %v333_v3 }
   0x7   :  { %11 = vsyncpa [#allocation5], 0  ;;  %v80_v8 = vrot.slane %v76_v6, %v57_v5  ;;  %v58_v9 = vrot.slane %v54_v7, %v57_v5  ;;  %s334_s0 = smov 2   ;;  %vm46_vm9 = vcmask 263176   ;;  %v335_v12 = vmov 0.0   ;;  %s336_s5 = smov 127  }
   0x8   :  { %281 = vmatprep.subr.bf16.mxu0 %v335_v12  ;;  %287 = vmatprep.subr.bf16.mxu1 %v335_v12  ;;  %vm62_vm12 = vcmask 254976   ;;  %vm337_vm14 = vmmov 0   ;;  %s338_s26 = smov 126   ;;  %v49_v21 = vld [vmem:[%s433_s3] sm:$0xff]  ;;  %vm70_vm15 = vcmask 257026   ;;  %vm109_vm0 = vcmask 1045504  }
   0x9   :  { %vm81_vm7 = vcmp.eq.s32.totalorder %v80_v8, 1  ;;  %vm59_vm10 = vcmp.eq.s32.totalorder %v58_v9, 1  ;;  %283 = vmatprep.mubr.msk.bf16.mxu0 %vm337_vm14, %v335_v12  ;;  %291 = vmatprep.mubr.msk.bf16.mxu1 %vm337_vm14, %v335_v12  ;;  %v48_v26 = vld [vmem:[%s431_s1] sm:$0xf]  ;;  %vm105_vm1 = vcmask 97280   ;;  %vm154_vm2 = vcmask 261120  }
   0xa   :  { %vm82_vm8 = vmpackc.low %vm81_vm7, %vm81_vm7  ;;  %vm164_vm3 = vcmask 265224   ;;  %vm170_vm4 = vcmask 257024   ;;  %v167_v42 = vld [vmem:[%s434_s4] sm:$0xff]  ;;  %vm206_vm5 = vcmask 1043456   ;;  %vm202_vm6 = vcmask 195584   ;;  %s339_s4 = smov [#allocation4]  }
   0xb   :  { %v83_v10 = vsel %vm82_vm8, 65537, %v333_v3  ;;  %vm384_vm11 = vmpackc.low %vm59_vm10, %vm59_vm10  ;;  %v166_v48 = vld [vmem:[%s432_s2] sm:$0xf]  ;;  %s260_s9 = sshll.u32 %s339_s4, 4  ;;  %s261_s9 = int_to_ptr.vmem [resolvable:$true] %s260_s9 }
   0xc   :  { %84 = vrot.lane.b32.xlu0 %v83_v10, %s334_s0  ;;  %s308_s10 = scalar_lea.vmem %s261_s9, 128  ;;  %p313_p1 = scmp.lt.s32.totalorder %s261_s9, %s261_s9 }
   0xd   :  { %p309_p0 = scmp.ne.s32.totalorder %s261_s9, %s308_s10  ;;  %p314_p2 = scmp.lt.s32.totalorder %s308_s10, %s308_s10 }
   0xf   :  { %p315_p3 = por %p314_p2, %p313_p1 }
  0x10   :  { %97 = vperm.xlu0 %303, %v49_v21  }
  0x11   :  { %p316_p4 = pnand %p315_p3, %p309_p0 }
  0x74   :  { %v44_v11 = vpop.permute.xlu0 %43 }
  0x75   :  { %47 = vst.msk [vmem:[#allocation2] sm:$0x3] %vm46_vm9, %v44_v11 }
  0x7c   :  { %v64_v14 = vld [vmem:[#allocation2] sm:$0x3] }
  0x7d   :  { %v50_v15 = vld [vmem:[#allocation2] sm:$0x3]  ;;  %v66_v16 = vrot.slane %v64_v14, 6 }
  0x7e   :  { %v61_v17 = vsel %vm384_vm11, %v50_v15, 0  ;;  %v85_v18 = vpop.permute.xlu0 %84  ;;  %v72_v19 = vld [vmem:[#allocation2] sm:$0x3] }
  0x7f   :  { %63 = vst.msk [vmem:[#allocation3] sm:$0x3] %vm62_vm12, %v61_v17  ;;  %vm86_vm13 = vcmp.ne.s16.totalorder %v85_v18, 0  ;;  %67 = vrot.lane.b32.xlu1 %v66_v16, %s336_s5 }
  0x80   :  { %v87_v20 = vsel %vm86_vm13, %v72_v19, 0 }
  0x83   :  { %89 = vrot.lane.b32.xlu1 %v87_v20, %s338_s26 }
  0x8f   :  { %v98_v27 = vpop.permute.xlu0 %97 }
  0xf1   :  { %v68_v22 = vpop.permute.xlu1 %67 }
  0xf2   :  { %71 = vst.msk [vmem:[#allocation3] sm:$0xc] %vm70_vm15, %v68_v22 }
  0xf5   :  { %v90_v23 = vpop.permute.xlu1 %89 }
  0xf6   :  { %92 = vst.msk [vmem:[#allocation3 + $0x4] sm:$0x3] %vm62_vm12, %v90_v23 }
  0xfd   :  { %v305_v24 = vld [vmem:[#allocation3] sm:$0x3f]  }
  0xfe   :  { %v111_v25 = vsel %vm109_vm0, %v305_v24, 0 }
  0xff   :  { %282 = vmatpush3.bf16.msra.mxu0 %v111_v25 }
 0x102   :  { %284 = vmatmul.mubr.msk.bf16.vlgmr.msra.gmra.mrb[0].mxu0 %vm105_vm1, %v48_v26 }
 0x1d5   :  { %v147_v28 = vpop.f32.mrb[0].mxu0 }
 0x1d6   :  { %v148_v29 = vadd.f32 %v147_v28, %v98_v27  ;;  %v285_v30 = vpop.f32.mrb[1].mxu0 }
 0x1d7   :  { %v150_v31 = vpop.f32.mrb[2].mxu0 }
 0x1d8   :  { %v153_v32 = vmax.f32 %v148_v29, 0.0  ;;  %v286_v33 = vpop.f32.mrb[3].mxu0 }
 0x1da   :  { %155 = vst.msk [vmem:[#allocation4] sm:$0xff] %vm154_vm2, %v153_v32 }
 0x1e1   :  { %v156_v34 = vld [vmem:[#allocation4] sm:$0xff] }
 0x1e2   :  { %v275_v35 = vpack.c.bf16 %v156_v34, %v156_v34 }
 0x1e4   :  { %161 = vrot.lane.b32.xlu1 %v275_v35, %s332_s23 }
 0x256   :  { %v162_v36 = vpop.permute.xlu1 %161 }
 0x257   :  { %165 = vst.msk [vmem:[#allocation2] sm:$0xf] %vm164_vm3, %v162_v36 }
 0x25e   :  { %v172_v37 = vld [vmem:[#allocation2] sm:$0xf] }
 0x25f   :  { %v178_v38 = vld [vmem:[#allocation2] sm:$0xf]  ;;  %174 = vrot.lane.b32.xlu1 %v172_v37, %s336_s5 }
 0x260   :  { %v168_v39 = vld [vmem:[#allocation2] sm:$0xf]  ;;  %v179_v40 = vsel %vm86_vm13, %v178_v38, 0 }
 0x261   :  { %v169_v41 = vsel %vm384_vm11, %v168_v39, 0  ;;  %181 = vrot.lane.b32.xlu0 %v179_v40, %s338_s26 }
 0x262   :  { %171 = vst.msk [vmem:[#allocation3] sm:$0xf] %vm170_vm4, %v169_v41 }
 0x263   :  { %190 = vperm.xlu1 %304, %v167_v42  }
 0x2d1   :  { %v175_v43 = vpop.permute.xlu1 %174 }
 0x2d2   :  { %177 = vst.msk [vmem:[#allocation3 + $0x4] sm:$0xf] %vm170_vm4, %v175_v43 }
 0x2d3   :  { %v182_v44 = vpop.permute.xlu0 %181 }
 0x2d4   :  { %184 = vst.msk [vmem:[#allocation3 + $0x8] sm:$0xf] %vm170_vm4, %v182_v44 }
 0x2d9   :  { %v306_v45 = vld [vmem:[#allocation3] sm:$0xff]  }
 0x2da   :  { %288 = vmatpush3.bf16.msra.mxu1 %v306_v45 }
 0x2db   :  { %v307_v46 = vld [vmem:[#allocation3 + $0x8] ss:$0 sps:$4 sm:$0xff]   ;;  %289 = vmatprep.subr.bf16.mxu1 %v335_v12 }
 0x2dc   :  { %v208_v47 = vsel %vm206_vm5, %v307_v46, 0 }
 0x2de   :  { %290 = vmatpush3.bf16.msra.mxu1 %v208_v47 }
 0x2e1   :  { %292 = vmatmul.mubr.msk.bf16.vlgmr.msra.gmra.mrb[0].mxu1 %vm202_vm6, %v166_v48 }
 0x2e2   :  { %v191_v49 = vpop.permute.xlu1 %190 }
 0x3b4   :  { %v244_v50 = vpop.f32.mrb[0].mxu1 }
 0x3b5   :  { %v245_v51 = vadd.f32 %v244_v50, %v191_v49  ;;  %v293_v52 = vpop.f32.mrb[1].mxu1 }
 0x3b6   :  { %v247_v53 = vpop.f32.mrb[2].mxu1 }
 0x3b7   :  { %v250_v54 = vmax.f32 %v245_v51, 0.0  ;;  %v294_v55 = vpop.f32.mrb[3].mxu1 }
 0x3b9   :  { %v252_v56 = vadd.f32 %v250_v54, %v156_v34 }
 0x3bb   :  { %253 = vst.msk [vmem:[#allocation4] sm:$0xff] %vm154_vm2, %v252_v56 }
 0x3bc   :  { %319 = shalt.err (!%p316_p4)
}
 0x3bd   :  { %s320_s12 = scalar_lea.hbm %s436_s6, 128 }
 0x3be   :  { %p321_p5 = scmp.ne.s32.totalorder %s436_s6, %s320_s12  ;;  %p324_p6 = scmp.lt.u32.totalorder %s320_s12, %s436_s6 }
 0x3c0   :  { %p326_p7 = pnand %p324_p6, %p321_p5 }
 0x3c2   :  { %329 = shalt.err (!%p326_p7)
}
 0x3c3   :  { %263 = dma.vmem_to_hbm [thread:$0]  %s261_s9, 128, %s436_s6, [#allocation5]  }
 0x3c4   :  { %330 = dma.done.wait [#allocation5], 128  }
 0x3c5   :  { %331 = vsyncadd [#allocation5], 4294967168 }
 0x3c6   :  { %267 = vsyncpa [#allocation5], 1 }

</bundles_post_ra>
